<compile_context>
chip_gen: v6e
topology: v6e:2x2x1
jax: 0.10.0
libtpu: 0.0.40
codegen_flags: <defaults>
</compile_context>

<pallas_src>
import functools

import jax
import jax.numpy as jnp
from jax.experimental import pallas as pl
from jax.experimental.pallas import tpu as pltpu


def _round_up(x: int, m: int) -> int:
    return (x + m - 1) // m * m


def _n15_kernel(pred_ref, target_ref, r2_ref,
                sum_t_ref, sum_tt_ref, sum_res_ref, *, n_true: int):
    i = pl.program_id(1)  # batch (reduction) axis, innermost

    @pl.when(i == 0)
    def _():
        sum_t_ref[...] = jnp.zeros_like(sum_t_ref)
        sum_tt_ref[...] = jnp.zeros_like(sum_tt_ref)
        sum_res_ref[...] = jnp.zeros_like(sum_res_ref)

    t = target_ref[...].astype(jnp.float32)   # (tile_n, tile_d)
    p = pred_ref[...].astype(jnp.float32)     # (tile_n, tile_d)
    diff = p - t

    # Per-lane (feature-column) partial sums over this batch tile.
    sum_t_ref[...] += jnp.sum(t, axis=0, keepdims=True)
    sum_tt_ref[...] += jnp.sum(t * t, axis=0, keepdims=True)
    sum_res_ref[...] += jnp.sum(diff * diff, axis=0, keepdims=True)

    @pl.when(i == pl.num_programs(1) - 1)
    def _():
        st = sum_t_ref[...]
        # One-pass ss_tot = sum(t^2) - (sum t)^2 / N  (accumulated in f32).
        ss_tot = sum_tt_ref[...] - st * st * (1.0 / n_true)
        ss_res = sum_res_ref[...]
        # NOTE: ss_tot == 0 (constant target column) yields inf/nan, matching
        # the PyTorch reference.  Padded lanes also hit 0/0 but are sliced off
        # in the wrapper before the mean.
        r2_ref[...] = jnp.abs(1.0 - ss_res / ss_tot)


def n15_loss(pred: jax.Array, target: jax.Array) -> jax.Array:
    assert pred.shape == target.shape
    n = pred.shape[0]
    pred2 = pred.reshape(n, -1)
    target2 = target.reshape(n, -1)
    d = pred2.shape[1]
    dtype_bytes = jnp.dtype(pred2.dtype).itemsize

    # Per-generation VMEM budget (v7x: 64 MiB per TC; v5e/v6e: 128 MiB).
    try:
        vmem_bytes = pltpu.get_tpu_info().vmem_capacity_bytes
    except Exception:
        vmem_bytes = 64 * 1024 * 1024  # conservative fallback (v7x)
    budget = int(vmem_bytes * 0.5)

    n_pad8 = _round_up(n, 8)
    d_pad128 = _round_up(d, 128)

    # Batch tile: whole (sublane-rounded) batch if small, else fixed 512-row
    # chunks so the feature tile stays independent of N.
    tile_n = n_pad8 if n_pad8 <= 1024 else 512
    # Feature tile: largest multiple of 128 whose double-buffered two-input
    # footprint fits the budget; clamp to [128, min(padded D, 8192)] so huge
    # D still yields multiple "parallel" D tiles (megacore) and sane tiles.
    per_lane = 2 * 2 * tile_n * dtype_bytes        # 2 inputs x 2 buffers x rows
    tile_d = max(128, (budget // per_lane) // 128 * 128)
    tile_d = min(tile_d, d_pad128, 8192)

    n_pad = _round_up(n, tile_n)
    d_pad = _round_up(d, tile_d)
    if (n_pad, d_pad) != (n, d):
        pred2 = jnp.pad(pred2, ((0, n_pad - n), (0, d_pad - d)))
        target2 = jnp.pad(target2, ((0, n_pad - n), (0, d_pad - d)))

    grid = (d_pad // tile_d, n_pad // tile_n)      # reduction axis (N) last

    # Scoped-VMEM limit: double-buffered inputs + output + scratch, with margin.
    footprint = (2 * 2 * tile_n * tile_d * dtype_bytes
                 + 2 * tile_d * 4 + 3 * 8 * tile_d * 4)
    vmem_limit = min(int(vmem_bytes * 0.9), max(32 << 20, footprint + (4 << 20)))

    kernel = functools.partial(_n15_kernel, n_true=n)
    r2 = pl.pallas_call(
        kernel,
        out_shape=jax.ShapeDtypeStruct((1, d_pad), jnp.float32),
        grid_spec=pltpu.PrefetchScalarGridSpec(
            num_scalar_prefetch=0,
            grid=grid,
            in_specs=[
                pl.BlockSpec((tile_n, tile_d), lambda j, i: (i, j)),
                pl.BlockSpec((tile_n, tile_d), lambda j, i: (i, j)),
            ],
            out_specs=pl.BlockSpec((1, tile_d), lambda j, i: (0, j)),
            scratch_shapes=[
                pltpu.VMEM((1, tile_d), jnp.float32),   # sum(t)
                pltpu.VMEM((1, tile_d), jnp.float32),   # sum(t^2)
                pltpu.VMEM((1, tile_d), jnp.float32),   # sum((p-t)^2)
            ],
        ),
        compiler_params=pltpu.CompilerParams(
            dimension_semantics=("parallel", "arbitrary"),
            vmem_limit_bytes=vmem_limit,
        ),
    )(pred2, target2)

    # Final tiny reduction over the D real lanes (padded lanes sliced off).
    return jnp.mean(r2[0, :d])


def n15_loss_ref(pred, target):
    target_mean = jnp.mean(target, axis=0)
    ss_tot = jnp.sum(jnp.abs(target - target_mean) ** 2, axis=0)
    ss_res = jnp.sum(jnp.abs(pred - target) ** 2, axis=0)
    p = ss_res / ss_tot
    return jnp.mean(jnp.abs(1.0 - p))


if __name__ == "__main__":
    key = jax.random.PRNGKey(0)
    k1, k2, k3, k4 = jax.random.split(key, 4)

    # Case 1: N=8, feature dims (2, 128) -> D=256 (aligned, no padding).
    pred = jax.random.normal(k1, (8, 2, 128), dtype=jnp.float32)
    target = pred + 0.1 * jax.random.normal(k2, (8, 2, 128), dtype=jnp.float32)
    loss = jax.block_until_ready(n15_loss(pred, target))
    ref = jax.block_until_ready(n15_loss_ref(pred, target))
    assert jnp.isfinite(loss), "loss is not finite"
    assert jnp.abs(loss - ref) < 1e-4, f"mismatch: pallas={loss} ref={ref}"

    # Case 2: N=10, feature dims (3, 50) -> D=150 (exercises N and D padding).
    pred2 = jax.random.normal(k3, (10, 3, 50), dtype=jnp.float32)
    target2 = pred2 + 0.2 * jax.random.normal(k4, (10, 3, 50), dtype=jnp.float32)
    loss2 = jax.block_until_ready(n15_loss(pred2, target2))
    ref2 = jax.block_until_ready(n15_loss_ref(pred2, target2))
    assert jnp.isfinite(loss2), "loss2 is not finite"
    assert jnp.abs(loss2 - ref2) < 1e-4, f"mismatch: pallas={loss2} ref={ref2}"

    print("KERNEL_OK")
</pallas_src>

<mosaic_0001>
module attributes {stable_mosaic.version = 11 : i64} {
  func.func @_n15_kernel(%arg0: i32, %arg1: i32, %arg2: memref<8x256xf32, #tpu.memory_space<vmem>>, %arg3: memref<8x256xf32, #tpu.memory_space<vmem>>, %arg4: memref<1x256xf32, #tpu.memory_space<vmem>>, %arg5: memref<1x256xf32, #tpu.memory_space<vmem>>, %arg6: memref<1x256xf32, #tpu.memory_space<vmem>>, %arg7: memref<1x256xf32, #tpu.memory_space<vmem>>) attributes {dimension_semantics = [#tpu.dimension_semantics<parallel>, #tpu.dimension_semantics<arbitrary>], iteration_bounds = array<i64: 1, 1>, scalar_prefetch = 0 : i64, scratch_operands = 3 : i64, tpu.core_type = #tpu.core_type<tc>, window_params = [{transform_indices = @transform_0, window_bounds = array<i64: 8, 256>}, {transform_indices = @transform_1, window_bounds = array<i64: 8, 256>}, {transform_indices = @transform_2, window_bounds = array<i64: 1, 256>}]} {
    %c0_i32 = arith.constant 0 : i32
    %0 = arith.cmpi eq, %arg1, %c0_i32 : i32
    %1 = arith.extui %0 : i1 to i32
    %c0_i32_0 = arith.constant 0 : i32
    %2 = arith.cmpi ne, %1, %c0_i32_0 : i32
    scf.if %2 {
      %cst_20 = arith.constant 0.000000e+00 : f32
      %26 = vector.broadcast %cst_20 : f32 to vector<1x256xf32>
      %c0_21 = arith.constant 0 : index
      %c0_22 = arith.constant 0 : index
      %27 = vector.load %arg5[%c0_21, %c0_22] : memref<1x256xf32, #tpu.memory_space<vmem>>, vector<1x256xf32>
      tpu.vector_store %arg5[%c0_21, %c0_22], %26 {strides = array<i32>} : memref<1x256xf32, #tpu.memory_space<vmem>>, vector<1x256xf32>,
      %cst_23 = arith.constant 0.000000e+00 : f32
      %28 = vector.broadcast %cst_23 : f32 to vector<1x256xf32>
      %c0_24 = arith.constant 0 : index
      %c0_25 = arith.constant 0 : index
      %29 = vector.load %arg6[%c0_24, %c0_25] : memref<1x256xf32, #tpu.memory_space<vmem>>, vector<1x256xf32>
      tpu.vector_store %arg6[%c0_24, %c0_25], %28 {strides = array<i32>} : memref<1x256xf32, #tpu.memory_space<vmem>>, vector<1x256xf32>,
      %cst_26 = arith.constant 0.000000e+00 : f32
      %30 = vector.broadcast %cst_26 : f32 to vector<1x256xf32>
      %c0_27 = arith.constant 0 : index
      %c0_28 = arith.constant 0 : index
      %31 = vector.load %arg7[%c0_27, %c0_28] : memref<1x256xf32, #tpu.memory_space<vmem>>, vector<1x256xf32>
      tpu.vector_store %arg7[%c0_27, %c0_28], %30 {strides = array<i32>} : memref<1x256xf32, #tpu.memory_space<vmem>>, vector<1x256xf32>,
    } else {
    }
    %c0 = arith.constant 0 : index
    %c0_1 = arith.constant 0 : index
    %3 = vector.load %arg3[%c0, %c0_1] : memref<8x256xf32, #tpu.memory_space<vmem>>, vector<8x256xf32>
    %c0_2 = arith.constant 0 : index
    %c0_3 = arith.constant 0 : index
    %4 = vector.load %arg2[%c0_2, %c0_3] : memref<8x256xf32, #tpu.memory_space<vmem>>, vector<8x256xf32>
    %5 = arith.subf %4, %3 : vector<8x256xf32>
    %c0_4 = arith.constant 0 : index
    %c0_5 = arith.constant 0 : index
    %6 = vector.load %arg5[%c0_4, %c0_5] : memref<1x256xf32, #tpu.memory_space<vmem>>, vector<1x256xf32>
    %cst = arith.constant dense<0.000000e+00> : vector<256xf32>
    %7 = vector.multi_reduction <add>, %3, %cst [0] : vector<8x256xf32> to vector<256xf32>
    %8 = vector.shape_cast %7 : vector<256xf32> to vector<1x256xf32>
    %9 = arith.addf %6, %8 : vector<1x256xf32>
    %c0_6 = arith.constant 0 : index
    %c0_7 = arith.constant 0 : index
    %10 = vector.load %arg5[%c0_6, %c0_7] : memref<1x256xf32, #tpu.memory_space<vmem>>, vector<1x256xf32>
    tpu.vector_store %arg5[%c0_6, %c0_7], %9 {strides = array<i32>} : memref<1x256xf32, #tpu.memory_space<vmem>>, vector<1x256xf32>,
    %c0_8 = arith.constant 0 : index
    %c0_9 = arith.constant 0 : index
    %11 = vector.load %arg6[%c0_8, %c0_9] : memref<1x256xf32, #tpu.memory_space<vmem>>, vector<1x256xf32>
    %12 = arith.mulf %3, %3 : vector<8x256xf32>
    %cst_10 = arith.constant dense<0.000000e+00> : vector<256xf32>
    %13 = vector.multi_reduction <add>, %12, %cst_10 [0] : vector<8x256xf32> to vector<256xf32>
    %14 = vector.shape_cast %13 : vector<256xf32> to vector<1x256xf32>
    %15 = arith.addf %11, %14 : vector<1x256xf32>
    %c0_11 = arith.constant 0 : index
    %c0_12 = arith.constant 0 : index
    %16 = vector.load %arg6[%c0_11, %c0_12] : memref<1x256xf32, #tpu.memory_space<vmem>>, vector<1x256xf32>
    tpu.vector_store %arg6[%c0_11, %c0_12], %15 {strides = array<i32>} : memref<1x256xf32, #tpu.memory_space<vmem>>, vector<1x256xf32>,
    %c0_13 = arith.constant 0 : index
    %c0_14 = arith.constant 0 : index
    %17 = vector.load %arg7[%c0_13, %c0_14] : memref<1x256xf32, #tpu.memory_space<vmem>>, vector<1x256xf32>
    %18 = arith.mulf %5, %5 : vector<8x256xf32>
    %cst_15 = arith.constant dense<0.000000e+00> : vector<256xf32>
    %19 = vector.multi_reduction <add>, %18, %cst_15 [0] : vector<8x256xf32> to vector<256xf32>
    %20 = vector.shape_cast %19 : vector<256xf32> to vector<1x256xf32>
    %21 = arith.addf %17, %20 : vector<1x256xf32>
    %c0_16 = arith.constant 0 : index
    %c0_17 = arith.constant 0 : index
    %22 = vector.load %arg7[%c0_16, %c0_17] : memref<1x256xf32, #tpu.memory_space<vmem>>, vector<1x256xf32>
    tpu.vector_store %arg7[%c0_16, %c0_17], %21 {strides = array<i32>} : memref<1x256xf32, #tpu.memory_space<vmem>>, vector<1x256xf32>,
    %c0_i32_18 = arith.constant 0 : i32
    %23 = arith.cmpi eq, %arg1, %c0_i32_18 : i32
    %24 = arith.extui %23 : i1 to i32
    %c0_i32_19 = arith.constant 0 : i32
    %25 = arith.cmpi ne, %24, %c0_i32_19 : i32
    scf.if %25 {
      %c0_20 = arith.constant 0 : index
      %c0_21 = arith.constant 0 : index
      %26 = vector.load %arg5[%c0_20, %c0_21] : memref<1x256xf32, #tpu.memory_space<vmem>>, vector<1x256xf32>
      %c0_22 = arith.constant 0 : index
      %c0_23 = arith.constant 0 : index
      %27 = vector.load %arg6[%c0_22, %c0_23] : memref<1x256xf32, #tpu.memory_space<vmem>>, vector<1x256xf32>
      %28 = arith.mulf %26, %26 : vector<1x256xf32>
      %cst_24 = arith.constant 1.250000e-01 : f32
      %29 = vector.broadcast %cst_24 : f32 to vector<1x256xf32>
      %30 = arith.mulf %28, %29 : vector<1x256xf32>
      %31 = arith.subf %27, %30 : vector<1x256xf32>
      %c0_25 = arith.constant 0 : index
      %c0_26 = arith.constant 0 : index
      %32 = vector.load %arg7[%c0_25, %c0_26] : memref<1x256xf32, #tpu.memory_space<vmem>>, vector<1x256xf32>
      %33 = arith.divf %32, %31 : vector<1x256xf32>
      %cst_27 = arith.constant 1.000000e+00 : f32
      %34 = vector.broadcast %cst_27 : f32 to vector<1x256xf32>
      %35 = arith.subf %34, %33 : vector<1x256xf32>
      %36 = math.absf %35 : vector<1x256xf32>
      %c0_28 = arith.constant 0 : index
      %c0_29 = arith.constant 0 : index
      %37 = vector.load %arg4[%c0_28, %c0_29] : memref<1x256xf32, #tpu.memory_space<vmem>>, vector<1x256xf32>
      tpu.vector_store %arg4[%c0_28, %c0_29], %36 {strides = array<i32>} : memref<1x256xf32, #tpu.memory_space<vmem>>, vector<1x256xf32>,
    } else {
    }
    return
  }
  func.func @transform_0(%arg0: i32, %arg1: i32) -> (i32, i32) {
    %c0_i32 = arith.constant 0 : i32
    return %arg1, %arg0 : i32, i32
  }
  func.func @transform_1(%arg0: i32, %arg1: i32) -> (i32, i32) {
    %c0_i32 = arith.constant 0 : i32
    return %arg1, %arg0 : i32, i32
  }
  func.func @transform_2(%arg0: i32, %arg1: i32) -> (i32, i32) {
    %c0_i32 = arith.constant 0 : i32
    %c0_i32_0 = arith.constant 0 : i32
    return %c0_i32, %arg0 : i32, i32
  }
}

</mosaic_0001>

<bundles_post_ra>
// kernel: tpu_custom_call.1
= control target key start
LH: loop header
LB: loop body
LE: loop exit
PB: predicated region body
PF: predicated region fallthrough
CT: control target
= control target key end

     0   :  { %7 = vsyncpa [#allocation6], 0  ;;  %s310_s0 = inlined_call_operand.hbm [shape: f32[8,256], index: 0, kind: input, shape index: {}]   ;;  %s311_s1 = inlined_call_operand.hbm [shape: f32[8,256], index: 1, kind: input, shape index: {}]   ;;  %s312_s2 = inlined_call_operand.hbm [shape: f32[1,256], index: 2, kind: output, shape index: {}]  }
   0x1   :  { %8 = vsyncpa [#allocation9], 0 }
   0x2   :  { %9 = vsyncpa [#allocation7], 0  ;;  %s263_s9 = smov [#allocation5]   ;;  %s264_s11 = smov [#allocation8]  }
   0x3   :  { %s16_s10 = sshll.u32 %s263_s9, 4  ;;  %s26_s12 = sshll.u32 %s264_s11, 4  ;;  %s17_s10 = int_to_ptr.vmem [resolvable:$true] %s16_s10  ;;  %s27_s12 = int_to_ptr.vmem [resolvable:$true] %s26_s12 }
   0x4   :  { %s205_s13 = scalar_lea.vmem %s17_s10, 256  ;;  %p210_p1 = scmp.lt.s32.totalorder %s17_s10, %s17_s10 }
   0x5   :  { %p206_p0 = scmp.ne.s32.totalorder %s17_s10, %s205_s13  ;;  %p211_p2 = scmp.lt.s32.totalorder %s205_s13, %s205_s13 }
   0x7   :  { %p212_p3 = por %p211_p2, %p210_p1 }
   0x9   :  { %p213_p4 = pnand %p212_p3, %p206_p0 }
   0xb   :  { %216 = shalt.err (!%p213_p4)
}
   0xc   :  { %19 = dma.hbm_to_vmem [thread:$0]  %s310_s0, 256, %s17_s10, [#allocation6]  }
   0xd   :  { %s225_s16 = scalar_lea.vmem %s27_s12, 256  ;;  %p230_p6 = scmp.lt.s32.totalorder %s27_s12, %s27_s12 }
   0xe   :  { %p226_p5 = scmp.ne.s32.totalorder %s27_s12, %s225_s16  ;;  %p231_p7 = scmp.lt.s32.totalorder %s225_s16, %s225_s16 }
  0x10   :  { %p232_p8 = por %p231_p7, %p230_p6 }
  0x12   :  { %p233_p9 = pnand %p232_p8, %p226_p5 }
  0x14   :  { %236 = shalt.err (!%p233_p9)
}
  0x15   :  { %29 = dma.hbm_to_vmem [thread:$0]  %s311_s1, 256, %s27_s12, [#allocation9]  }
  0x16   :  { %257 = dma.done.wait [#allocation6], 256  }
  0x17   :  { %258 = vsyncadd [#allocation6], 4294967040 }
  0x18   :  { %259 = dma.done.wait [#allocation9], 256  }
  0x19   :  { %260 = vsyncadd [#allocation9], 4294967040  ;;  %v40_v0 = vlaneseq  ;;  %v265_v2 = vmov 0.0   ;;  %v47_v3 = vld [vmem:[#allocation8] sm:$0xff]  ;;  %v48_v4 = vld [vmem:[#allocation8 + $0x8] sm:$0xff]  ;;  %s267_s0 = smov [#allocation10]  }
  0x1a   :  { %v49_v5 = vld [vmem:[#allocation5] sm:$0xff]  ;;  %v54_v6 = vrot.slane %v47_v3, 4  ;;  %v60_v7 = vrot.slane %v48_v4, 4  ;;  %v91_v8 = vmul.f32 %v47_v3, %v47_v3  ;;  %v92_v9 = vmul.f32 %v48_v4, %v48_v4  ;;  %v50_v10 = vld [vmem:[#allocation5 + $0x8] sm:$0xff]  ;;  %s180_s1 = sshll.u32 %s267_s0, 4  ;;  %s181_s1 = int_to_ptr.vmem [resolvable:$true] %s180_s1 }
  0x1b   :  { %vm289_vm0 = vcmp.lt.s32.totalorder %v40_v0, 256  ;;  %v266_v11 = vmov 1966171168   ;;  %v51_v13 = vsub.f32 %v49_v5, %v47_v3  ;;  %v52_v14 = vsub.f32 %v50_v10, %v48_v4  ;;  %s237_s19 = scalar_lea.vmem %s181_s1, 32  ;;  %p242_p11 = scmp.lt.s32.totalorder %s181_s1, %s181_s1 }
  0x1c   :  { %44 = vst.msk [vmem:[#allocation2] sm:$0x3] %vm289_vm0, %v265_v2  ;;  %45 = vst.msk [vmem:[#allocation3] sm:$0x3] %vm289_vm0, %v265_v2  ;;  %v70_v12 = vunpack.c.l.s4 %v266_v11  ;;  %v55_v15 = vadd.f32 %v54_v6, %v47_v3  ;;  %v61_v16 = vadd.f32 %v60_v7, %v48_v4  ;;  %v93_v17 = vrot.slane %v91_v8, 4  ;;  %p238_p10 = scmp.ne.s32.totalorder %s181_s1, %s237_s19  ;;  %p243_p12 = scmp.lt.s32.totalorder %s237_s19, %s237_s19 }
  0x1d   :  { %46 = vst.msk [vmem:[#allocation4] sm:$0x3] %vm289_vm0, %v265_v2  ;;  %v99_v18 = vrot.slane %v92_v9, 4  ;;  %v126_v19 = vmul.f32 %v51_v13, %v51_v13  ;;  %v127_v20 = vmul.f32 %v52_v14, %v52_v14  ;;  %v73_v26 = vshrl.u32 %v40_v0, 7 }
  0x1e   :  { %v56_v21 = vrot.slane %v55_v15, 2  ;;  %v62_v22 = vrot.slane %v61_v16, 2  ;;  %v94_v23 = vadd.f32 %v93_v17, %v91_v8  ;;  %v71_v25 = vunpack.c.0.s8 %v70_v12  ;;  %p244_p13 = por %p243_p12, %p242_p11 }
  0x1f   :  { %v100_v24 = vadd.f32 %v99_v18, %v92_v9  ;;  %v128_v27 = vrot.slane %v126_v19, 4  ;;  %v134_v28 = vrot.slane %v127_v20, 4 }
  0x20   :  { %v57_v29 = vadd.f32 %v56_v21, %v55_v15  ;;  %v63_v30 = vadd.f32 %v62_v22, %v61_v16  ;;  %v95_v31 = vrot.slane %v94_v23, 2  ;;  %v74_v39 = vsub.s32 %v71_v25, %v73_v26  ;;  %p245_p0 = pnand %p244_p13, %p238_p10 }
  0x21   :  { %v101_v32 = vrot.slane %v100_v24, 2  ;;  %v129_v33 = vadd.f32 %v128_v27, %v126_v19  ;;  %v135_v34 = vadd.f32 %v134_v28, %v127_v20 }
  0x22   :  { %v58_v35 = vrot.slane %v57_v29, 1  ;;  %v64_v36 = vrot.slane %v63_v30, 1  ;;  %v96_v37 = vadd.f32 %v95_v31, %v94_v23 }
  0x23   :  { %v102_v38 = vadd.f32 %v101_v32, %v100_v24  ;;  %v130_v40 = vrot.slane %v129_v33, 2  ;;  %v136_v41 = vrot.slane %v135_v34, 2  ;;  %v53_v55 = vld [vmem:[#allocation2] sm:$0x3]  ;;  %v90_v60 = vld [vmem:[#allocation3] sm:$0x3] }
  0x24   :  { %v59_v42 = vadd.f32 %v58_v35, %v57_v29  ;;  %v65_v43 = vadd.f32 %v64_v36, %v63_v30  ;;  %v97_v44 = vrot.slane %v96_v37, 1  ;;  %v125_v3 = vld [vmem:[#allocation4] sm:$0x3] }
  0x25   :  { %v103_v45 = vrot.slane %v102_v38, 1  ;;  %v131_v46 = vadd.f32 %v130_v40, %v129_v33  ;;  %v137_v47 = vadd.f32 %v136_v41, %v135_v34 }
  0x26   :  { %v68_v48 = vcombine.low %v59_v42, %v65_v43  ;;  %v98_v49 = vadd.f32 %v97_v44, %v96_v37 }
  0x27   :  { %v104_v50 = vadd.f32 %v103_v45, %v102_v38  ;;  %v132_v51 = vrot.slane %v131_v46, 1  ;;  %v138_v52 = vrot.slane %v137_v47, 1 }
  0x28   :  { %v75_v53 = vrot.slane %v68_v48, %v74_v39 }
  0x29   :  { %v107_v54 = vcombine.low %v98_v49, %v104_v50  ;;  %v133_v56 = vadd.f32 %v132_v51, %v131_v46  ;;  %v139_v57 = vadd.f32 %v138_v52, %v137_v47 }
  0x2a   :  { %v82_v58 = vrot.slane %v75_v53, %v74_v39 }
  0x2b   :  { %v114_v59 = vrot.slane %v107_v54, %v74_v39  ;;  %v142_v61 = vcombine.low %v133_v56, %v139_v57 }
  0x2c   :  { %v84_v62 = vadd.f32 %v82_v58, %v53_v55 }
  0x2d   :  { %v121_v63 = vrot.slane %v114_v59, %v74_v39  ;;  %v149_v0 = vrot.slane %v142_v61, %v74_v39 }
  0x2e   :  { %89 = vst.msk [vmem:[#allocation2] sm:$0x3] %vm289_vm0, %v84_v62 }
  0x2f   :  { %v123_v2 = vadd.f32 %v121_v63, %v90_v60  ;;  %v156_v4 = vrot.slane %v149_v0, %v74_v39 }
  0x31   :  { %124 = vst.msk [vmem:[#allocation3] sm:$0x3] %vm289_vm0, %v123_v2  ;;  %v158_v5 = vadd.f32 %v156_v4, %v125_v3 }
  0x33   :  { %159 = vst.msk [vmem:[#allocation4] sm:$0x3] %vm289_vm0, %v158_v5 }
  0x35   :  { %v163_v6 = vld [vmem:[#allocation2] sm:$0x3] }
  0x36   :  { %v165_v7 = vmul.f32 %v163_v6, %v163_v6 }
  0x38   :  { %v164_v8 = vld [vmem:[#allocation3] sm:$0x3]  ;;  %v166_v9 = vmul.f32 0.125, %v165_v7 }
  0x3a   :  { %v167_v10 = vsub.f32 %v164_v8, %v166_v9  ;;  %v168_v11 = vld [vmem:[#allocation4] sm:$0x3] }
  0x3c   :  { %195 = vrcp.f32 %v167_v10 }
  0x49   :  { %v196_v12 = vpop.eup %195 }
  0x4a   :  { %v170_v13 = vmul.f32 %v196_v12, %v168_v11 }
  0x4c   :  { %v171_v14 = vsub.f32 1.0, %v170_v13 }
  0x4e   :  { %v172_v15 = vand.u32 2147483647, %v171_v14 }
  0x50   :  { %173 = vst.msk [vmem:[#allocation10] sm:$0x3] %vm289_vm0, %v172_v15 }
  0x51   :  { %248 = shalt.err (!%p245_p0)
}
  0x52   :  { %183 = dma.vmem_to_hbm [thread:$0]  %s181_s1, 32, %s312_s2, [#allocation7]  }
  0x53   :  { %261 = dma.done.wait [#allocation7], 32  }
  0x54   :  { %262 = vsyncadd [#allocation7], 4294967264 }
  0x55   :  { %187 = vsyncpa [#allocation6], 1 }
  0x56   :  { %188 = vsyncpa [#allocation9], 1 }
  0x57   :  { %189 = vsyncpa [#allocation7], 1 }

</bundles_post_ra>
